<compile_context>
chip_gen: v7x
topology: tpu7x:2x2x1
jax: 0.10.0
libtpu: 0.0.40
codegen_flags: <defaults>
</compile_context>

<pallas_src>
import jax
import jax.numpy as jnp
from jax.experimental import pallas as pl
from jax.experimental.pallas import tpu as pltpu


# -----------------------------------------------------------------------------
# Kernel: fused 1x1 Conv1d (scale pre-folded into W) + bias + ReLU for one
# (batch, L-tile).
#   x_ref    : (1, Cin, tile_l)   f32  (cast to bf16 in VMEM, right before dot)
#   w_ref    : (Cout, Cin)        bf16 (torch Conv1d weight[:,:,0] * BN scale)
#   bias_ref : (Cout, 1)          f32  (beta - mean*scale + scale*conv_bias)
#   o_ref    : (1, Cout, tile_l)  f32 (or bf16)
# -----------------------------------------------------------------------------
def _conv1x1_bn_relu_kernel(x_ref, w_ref, bias_ref, o_ref):
    x_bf = x_ref[0].astype(jnp.bfloat16)                       # (Cin, tile_l)
    acc = jnp.dot(w_ref[...], x_bf,
                  preferred_element_type=jnp.float32)          # (Cout, tile_l) f32
    y = acc + bias_ref[...]                                    # f32 epilogue
    o_ref[0] = jnp.maximum(y, 0.0).astype(o_ref.dtype)


def _pick_tile_l(L, Cin, Cout, out_bytes, *, cap=2048, vmem_budget=12 * 1024 * 1024):
    """Largest lane tile that keeps the double-buffered working set small.

    Working set per step ~= 2*(Cin*4 + Cout*out_bytes)*tile_l bytes (x is f32 in
    VMEM, output is out_bytes/elem), which must stay well under the default
    scoped VMEM limit on every generation (incl. v7x's 32 MiB default / 64 MiB
    physical).
    """
    per_lane = 2 * (Cin * 4 + Cout * out_bytes)
    max_tile = max(128, (vmem_budget // per_lane) // 128 * 128)
    if L <= max_tile:
        return L                      # single tile covering full L (== full dim is allowed)
    return min(max_tile, cap)         # multiple of 128; ragged edge block is masked


def graph_convolution(x, w, scale, bias, *, tile_l=None, out_dtype=jnp.float32):
    """x: (N, Cin, L) f32 -> (N, Cout, L) == ReLU(BN(Conv1d_k1(x))) (eval-mode BN)."""
    N, Cin, L = x.shape
    Cout = w.shape[0]

    # Fold BN scale into the weight (f32), then one tiny bf16 cast of (Cout, Cin).
    w_fold = (w.astype(jnp.float32) * scale.reshape(Cout, 1).astype(jnp.float32))
    w_b = w_fold.astype(jnp.bfloat16)
    bias2 = bias.reshape(Cout, 1).astype(jnp.float32)

    out_bytes = jnp.dtype(out_dtype).itemsize
    if tile_l is None:
        tile_l = _pick_tile_l(L, Cin, Cout, out_bytes)

    grid = (N, pl.cdiv(L, tile_l))
    out = pl.pallas_call(
        _conv1x1_bn_relu_kernel,
        out_shape=jax.ShapeDtypeStruct((N, Cout, L), out_dtype),
        grid=grid,
        in_specs=[
            pl.BlockSpec((1, Cin, tile_l), lambda n, l: (n, 0, l)),
            pl.BlockSpec((Cout, Cin), lambda n, l: (0, 0)),
            pl.BlockSpec((Cout, 1), lambda n, l: (0, 0)),
        ],
        out_specs=pl.BlockSpec((1, Cout, tile_l), lambda n, l: (n, 0, l)),
        compiler_params=pltpu.CompilerParams(
            dimension_semantics=("parallel", "parallel")),
    )(x, w_b, bias2)
    return out


# -----------------------------------------------------------------------------
# Deterministic synthetic parameters (Conv1d weight/bias + eval-mode BN folded).
# -----------------------------------------------------------------------------
def make_params(key, num_channel, eps=1e-5):
    k = jax.random.split(key, 6)
    C = num_channel
    w = 0.1 * jax.random.normal(k[0], (C, C), jnp.float32)      # Conv1d weight[:,:,0]
    b_conv = 0.1 * jax.random.normal(k[1], (C,), jnp.float32)   # Conv1d bias
    gamma = 1.0 + 0.1 * jax.random.normal(k[2], (C,), jnp.float32)
    beta = 0.1 * jax.random.normal(k[3], (C,), jnp.float32)
    mean = 0.1 * jax.random.normal(k[4], (C,), jnp.float32)
    var = 1.0 + 0.1 * jax.random.uniform(k[5], (C,), jnp.float32)

    scale = gamma / jnp.sqrt(var + eps)                # folded BN scale
    bias = beta - mean * scale + scale * b_conv        # folded BN shift + conv bias
    return w, scale, bias


def reference(x, w, scale, bias):
    """Pure-JAX f32 reference of the same forward pass."""
    y = jnp.einsum("oc,ncl->nol", w, x)
    y = y * scale[None, :, None] + bias[None, :, None]
    return jnp.maximum(y, 0.0)


if __name__ == "__main__":
    key = jax.random.PRNGKey(0)
    kx, kp = jax.random.split(key)

    N, C, L = 2, 32, 256          # num_channel = 32, sequence length = 256
    x = jax.random.normal(kx, (N, C, L), jnp.float32)
    w, scale, bias = make_params(kp, C)

    out = graph_convolution(x, w, scale, bias)     # tile_l auto -> full L, 2 grid steps
    out = jax.block_until_ready(out)

    assert out.shape == (N, C, L), out.shape
    assert bool(jnp.all(jnp.isfinite(out)))

    ref = reference(x, w, scale, bias)
    max_err = float(jnp.max(jnp.abs(out - ref)))
    assert bool(jnp.allclose(out, ref, rtol=2e-2, atol=2e-2)), max_err

    print("KERNEL_OK")
</pallas_src>

<mosaic_0001>
module attributes {stable_mosaic.version = 11 : i64} {
  func.func @_conv1x1_bn_relu_kernel(%arg0: i32, %arg1: i32, %arg2: memref<1x32x256xf32, #tpu.memory_space<vmem>>, %arg3: memref<32x32xbf16, #tpu.memory_space<vmem>>, %arg4: memref<32x1xf32, #tpu.memory_space<vmem>>, %arg5: memref<1x32x256xf32, #tpu.memory_space<vmem>>) attributes {dimension_semantics = [#tpu.dimension_semantics<parallel>, #tpu.dimension_semantics<parallel>], iteration_bounds = array<i64: 2, 1>, scalar_prefetch = 0 : i64, scratch_operands = 0 : i64, tpu.core_type = #tpu.core_type<tc>, window_params = [{transform_indices = @transform_0, window_bounds = array<i64: 1, 32, 256>}, {pipeline_mode = #tpu.pipeline_mode<synchronous>, transform_indices = @transform_1, window_bounds = array<i64: 32, 32>}, {pipeline_mode = #tpu.pipeline_mode<synchronous>, transform_indices = @transform_2, window_bounds = array<i64: 32, 1>}, {transform_indices = @transform_3, window_bounds = array<i64: 1, 32, 256>}]} {
    %c0 = arith.constant 0 : index
    %c0_0 = arith.constant 0 : index
    %c0_1 = arith.constant 0 : index
    %0 = vector.load %arg2[%c0, %c0_0, %c0_1] : memref<1x32x256xf32, #tpu.memory_space<vmem>>, vector<1x32x256xf32>
    %1 = vector.shape_cast %0 : vector<1x32x256xf32> to vector<32x256xf32>
    %2 = arith.truncf %1 : vector<32x256xf32> to vector<32x256xbf16>
    %c0_2 = arith.constant 0 : index
    %c0_3 = arith.constant 0 : index
    %3 = vector.load %arg3[%c0_2, %c0_3] : memref<32x32xbf16, #tpu.memory_space<vmem>>, vector<32x32xbf16>
    %cst = arith.constant dense<0.000000e+00> : vector<32x256xf32>
    %4 = tpu.matmul %3, %2, %cst {dimension_numbers = #tpu.dot_dimension_numbers<[1], [0], [0], [1], [0, 0, 1, 1], [], []>} : vector<32x32xbf16>, vector<32x256xbf16>, vector<32x256xf32> -> vector<32x256xf32>
    %c0_4 = arith.constant 0 : index
    %c0_5 = arith.constant 0 : index
    %5 = vector.load %arg4[%c0_4, %c0_5] : memref<32x1xf32, #tpu.memory_space<vmem>>, vector<32x1xf32>
    %6 = vector.broadcast %5 : vector<32x1xf32> to vector<32x256xf32>
    %7 = arith.addf %4, %6 : vector<32x256xf32>
    %cst_6 = arith.constant 0.000000e+00 : f32
    %8 = vector.broadcast %cst_6 : f32 to vector<32x256xf32>
    %9 = arith.maximumf %7, %8 : vector<32x256xf32>
    %c0_7 = arith.constant 0 : index
    %c0_8 = arith.constant 0 : index
    %c0_9 = arith.constant 0 : index
    %10 = vector.load %arg5[%c0_7, %c0_8, %c0_9] : memref<1x32x256xf32, #tpu.memory_space<vmem>>, vector<1x32x256xf32>
    %11 = vector.shape_cast %10 : vector<1x32x256xf32> to vector<32x256xf32>
    %12 = vector.shape_cast %9 : vector<32x256xf32> to vector<1x32x256xf32>
    tpu.vector_store %arg5[%c0_7, %c0_8, %c0_9], %12 {strides = array<i32>} : memref<1x32x256xf32, #tpu.memory_space<vmem>>, vector<1x32x256xf32>,
    return
  }
  func.func @transform_0(%arg0: i32, %arg1: i32) -> (i32, i32, i32) {
    %c0_i32 = arith.constant 0 : i32
    %c0_i32_0 = arith.constant 0 : i32
    return %arg0, %c0_i32, %arg1 : i32, i32, i32
  }
  func.func @transform_1(%arg0: i32, %arg1: i32) -> (i32, i32) {
    %c0_i32 = arith.constant 0 : i32
    %c0_i32_0 = arith.constant 0 : i32
    %c0_i32_1 = arith.constant 0 : i32
    return %c0_i32, %c0_i32_0 : i32, i32
  }
  func.func @transform_2(%arg0: i32, %arg1: i32) -> (i32, i32) {
    %c0_i32 = arith.constant 0 : i32
    %c0_i32_0 = arith.constant 0 : i32
    %c0_i32_1 = arith.constant 0 : i32
    return %c0_i32, %c0_i32_0 : i32, i32
  }
  func.func @transform_3(%arg0: i32, %arg1: i32) -> (i32, i32, i32) {
    %c0_i32 = arith.constant 0 : i32
    %c0_i32_0 = arith.constant 0 : i32
    return %arg0, %c0_i32, %arg1 : i32, i32, i32
  }
}

</mosaic_0001>

<bundles_post_ra>
// kernel: tpu_custom_call.1
= control target key start
LH: loop header
LB: loop body
LE: loop exit
PB: predicated region body
PF: predicated region fallthrough
CT: control target
= control target key end

     0   :  { %8 = vsyncpa [#allocation3], 0  ;;  %s884_s0 = inlined_call_operand.hbm [shape: f32[2,32,256], index: 0, kind: input, shape index: {}]   ;;  %s885_s1 = inlined_call_operand.vmem [shape: bf16[32,32], index: 1, kind: input, shape index: {}]   ;;  %s886_s2 = inlined_call_operand.vmem [shape: f32[32,1], index: 2, kind: input, shape index: {}]   ;;  %s887_s3 = inlined_call_operand.hbm [shape: f32[2,32,256], index: 3, kind: output, shape index: {}]  }
   0x1   :  { %10 = vsyncpa [#allocation3 + $0x1], 0 }
   0x2   :  { %11 = vsyncpa [#allocation4], 0 }
   0x3   :  { %13 = vsyncpa [#allocation4 + $0x1], 0  ;;  %s676_s12 = smov 0   ;;  %s678_s13 = smov 0  }
   0x4   :  { %s680_s14 = smov 0   ;;  %s682_s15 = smov 0  }
   0x5   :  { %s684_s16 = smov 0   ;;  %s686_s17 = smov 0  }
   0x6 LB: > { %s439_s18 = sadd.s32 4294967295, %s647_s17   ;;  %s440_s19 = sadd.s32 4294967294, %s647_s17   ;;  %s647_s17 = sphi %s686_s17, %s19_s17   ;;  %s643_s16 = sphi %s684_s16, %s902_s16   ;;  %s639_s15 = sphi %s682_s15, %s901_s15   ;;  %s635_s14 = sphi %s680_s14, %s900_s14   ;;  %s631_s13 = sphi %s678_s13, %s899_s13   ;;  %s627_s12 = sphi %s676_s12, %s898_s12  }
   0x7   : > { %s31_s20 = sadd.s32 1, %s643_s16  ;;  %s40_s21 = sadd.s32 1, %s635_s14 }
   0x8   : > { %p33_p0 = scmp.ge.s32.totalorder %s31_s20, 2  ;;  %p47_p1 = scmp.ne.s32.totalorder %s635_s14, %s631_s13 }
   0x9   : > { %p48_p2 = scmp.eq.s32.totalorder %s647_s17, 0  ;;  %p53_p3 = scmp.ne.s32.totalorder %s631_s13, %s627_s12 }
   0xa   : > { %s904_s20 = smov (%p33_p0, %s31_s20), 0  ;;  %p54_p5 = scmp.eq.s32.totalorder %s439_s18, 0 }
   0xb   : > { %p717_p4 = por %p48_p2, %p47_p1  ;;  %s35_s23 = ssub.s32 %s643_s16, %s904_s20 }
   0xc   : > { %p121_p6 = scmp.eq.s32.totalorder %s439_s18, 1  ;;  %p38_p7 = scmp.eq.s32.totalorder %s35_s23, 0 }
   0xd   : > { %p723_p8 = por %p54_p5, %p53_p3  ;;  %p127_p10 = scmp.eq.s32.totalorder %s440_s19, 1 }
   0xe   : > { %p727_p9 = por %p121_p6, %p47_p1  ;;  %p476_p13 = scmp.lt.s32.totalorder %s647_s17, 2 }
   0xf   : > { %s732_s26 = scalar_select %p38_p7, %s635_s14, %s40_s21  }
  0x10   : > { %s891_s25 = scalar_select %p727_p9, 1, 0 }
  0x11   : > { %p734_p11 = por %p127_p10, %p53_p3  ;;  %s153_s28 = sand.u32 1, %s635_s14  }
  0x12   : > { %s443_s29 = sshll.u32 %s153_s28, 6  ;;  %s458_s30 = sshll.u32 %s643_s16, 10 }
  0x13   : > { %s892_s27 = scalar_select %p734_p11, 1, 0 }
  0x14   : > { %s745_s6 = scalar_lea.hbm %s884_s0, %s458_s30  ;;  %s157_s7 = scalar_lea.vmem [#allocation2], %s443_s29 }
  0x15   : > { %s166_s8 = sshll.u32 %s157_s7, 4  ;;  %p751_p0 = pnand %p476_p13, %p717_p4  ;;  %s747_s8 = int_to_ptr.vmem [resolvable:$true] %s166_s8 }
  0x16   : > { %s756_s10 = scalar_lea.sflag [#allocation3], %s153_s28  ;;  %s535_s11 = scalar_lea.hbm %s745_s6, 1024 }
  0x17   : > { %p536_p2 = scmp.ne.s32.totalorder %s745_s6, %s535_s11  ;;  %p537_p3 = pneg %p751_p0 }
  0x18   : > { %s540_s21 = scalar_lea.hbm %s884_s0, 2048  ;;  %p541_p4 = scmp.lt.u32.totalorder %s745_s6, %s884_s0 }
  0x19   : > { %p538_p5 = pnand %p537_p3, %p536_p2  ;;  %p542_p7 = scmp.lt.u32.totalorder %s540_s21, %s535_s11 }
  0x1a   : > { %p544_p13 = scmp.lt.u32.totalorder %s535_s11, %s745_s6 }
  0x1b   : > { %p539_p6 = pneg %p538_p5  ;;  %p543_p10 = por %p542_p7, %p541_p4 }
  0x1d   : > { %p545_p12 = por %p544_p13, %p543_p10 }
  0x1f   : > { %p546_p1 = pnand %p545_p12, %p539_p6 }
  0x21   : > { %549 = shalt.err (!%p546_p1)
}
  0x22   : > { %s550_s28 = scalar_lea.vmem %s747_s8, 1024  ;;  %s649_s29 = smov [#allocation2]  }
  0x23   : > { %p551_p2 = scmp.ne.s32.totalorder %s747_s8, %s550_s28  ;;  %s555_s30 = sshll.u32 %s649_s29, 4  ;;  %s556_s30 = int_to_ptr.vmem [resolvable:$false] %s555_s30 }
  0x24   : > { %s557_s4 = scalar_lea.vmem %s556_s30, 2048  ;;  %p558_p9 = scmp.lt.s32.totalorder %s747_s8, %s556_s30 }
  0x25   : > { %p553_p5 = pnand %p551_p2, %p537_p3  ;;  %p559_p4 = scmp.lt.s32.totalorder %s557_s4, %s550_s28 }
  0x27   : > { %p554_p11 = pneg %p553_p5  ;;  %p560_p7 = por %p559_p4, %p558_p9 }
  0x29   : > { %p561_p10 = pnand %p560_p7, %p554_p11 }
  0x2b   : > { %564 = shalt.err (!%p561_p10)
}
  0x2c   : > { %s650_s5 = smov 256   ;;  %s651_s7 = smov 16  }
  0x2d   : > { %471 = dma.hbm_to_vmem [thread:$0]  (!%p751_p0), %s745_s6, 1024, %s747_s8, %s756_s10, %s650_s5, %s650_s5, %s651_s7  }
  0x2e   : > { %p174_p12 = scmp.lt.s32.totalorder %s647_s17, 3  ;;  %p894_p1 = scmp.ge.s32.totalorder %s647_s17, 1 }
  0x30   : > { %p175_p3 = pnand %p894_p1, %p174_p12 }
  0x31   : > { %s788_s11 = sand.u32 (!%p175_p3), 1, %s631_s13  }
  0x32   : > { %178 = sbr.rel (%p175_p3) target bundleno = 303 (0x12f), region = 32  ;;  %s447_s18 = sshll.u32 (!%p175_p3), %s788_s11, 6 }
  0x33   : > { %s181_s19 = scalar_lea.sflag (!%p175_p3), [#allocation3], %s788_s11  ;;  %s184_s21 = scalar_lea.vmem (!%p175_p3), [#allocation2], %s447_s18 }
  0x39   : > { %618 = dma.done.wait (%p723_p8), %s181_s19, 1024  }
  0x3a   : > { %620 = vsyncadd (%p723_p8), %s181_s19, 4294966272  ;;  %v652_v0 = vmov 0   ;;  %v211_v1 = vld [vmem:[%s184_s21 + $0x8] sm:$0xff]  ;;  %v213_v2 = vld [vmem:[%s184_s21 + $0x18] sm:$0xff]  ;;  %vm260_vm0 = vcmask 261120   ;;  %s818_s7 = scalar_lea.vmem [#allocation5], %s447_s18 }
  0x3b   : > { %299 = vmatprep.mubr.bf16.mxu0 %v652_v0  ;;  %309 = vmatprep.mubr.bf16.mxu1 %v652_v0  ;;  %v210_v3 = vld [vmem:[%s184_s21] sm:$0xff]  ;;  %v219_v4 = vpack.c.bf16 %v213_v2, %v211_v1  ;;  %v212_v5 = vld [vmem:[%s184_s21 + $0x10] sm:$0xff]  ;;  %v215_v6 = vld [vmem:[%s184_s21 + $0x28] sm:$0xff]  ;;  %s352_s19 = sshll.u32 %s818_s7, 4  ;;  %s337_s6 = scalar_lea.sflag [#allocation4], %s788_s11  ;;  %s822_s19 = int_to_ptr.vmem [resolvable:$true] %s352_s19 }
  0x3c   : > { %532 = vset.pattern.permute.xlu1 %v652_v0  ;;  %531 = vset.pattern.permute.xlu0 %v652_v0  ;;  %v217_v7 = vld [vmem:[%s184_s21 + $0x38] sm:$0xff]  ;;  %v218_v8 = vpack.c.bf16 %v212_v5, %v210_v3  ;;  %v214_v10 = vld [vmem:[%s184_s21 + $0x20] sm:$0xff]  ;;  %v216_v11 = vld [vmem:[%s184_s21 + $0x30] sm:$0xff]  ;;  %s459_s21 = sshll.u32 %s639_s15, 10  ;;  %s565_s8 = scalar_lea.vmem %s822_s19, 1024 }
  0x3d   : > { %v221_v9 = vpack.c.bf16 %v217_v7, %v215_v6  ;;  %267 = vmatprep.subr.bf16.mxu0 %v219_v4  ;;  %460 = vmatprep.subr.bf16.mxu1 %v219_v4  ;;  %v220_v12 = vpack.c.bf16 %v216_v11, %v214_v10  ;;  %v228_v13 = vld [vmem:[%s886_s2 + $0x10] sm:$0xff]  ;;  %v226_v14 = vld [vmem:[%s886_s2] sm:$0xff]  ;;  %v534_v16 = vld [vmem:[%s885_s1 + $0x8] sm:$0xff]   ;;  %s829_s24 = scalar_lea.hbm %s887_s3, %s459_s21  ;;  %p566_p8 = scmp.ne.s32.totalorder %s822_s19, %s565_s8 }
  0x3e   : > { %268 = vmatpush1.bf16.msra.mxu0 %v218_v8  ;;  %462 = vmatpush1.bf16.msra.mxu1 %v218_v8  ;;  %v533_v15 = vld [vmem:[%s885_s1] sm:$0xff]   ;;  %v229_v17 = vld [vmem:[%s886_s2 + $0x18] sm:$0xff]  ;;  %v227_v18 = vld [vmem:[%s886_s2 + $0x8] sm:$0xff]  ;;  %p895_p9 = scmp.ne.s32.totalorder %s891_s25, 0  ;;  %s653_s9 = smov [#allocation5]  }
  0x3f   : > { %269 = vmatprep.subr.bf16.mxu0 %v221_v9  ;;  %461 = vmatprep.subr.bf16.mxu1 %v221_v9  ;;  %s569_s10 = sshll.u32 %s653_s9, 4  ;;  %s570_s10 = int_to_ptr.vmem [resolvable:$false] %s569_s10 }
  0x40   : > { %242 = vperm.xlu1 %532, %v228_v13   ;;  %232 = vperm.xlu0 %531, %v226_v14   ;;  %p567_p11 = pnand %p566_p8, %p895_p9  ;;  %s571_s22 = scalar_lea.vmem %s570_s10, 2048 }
  0x41   : > { %p572_p6 = scmp.lt.s32.totalorder %s822_s19, %s570_s10  ;;  %p573_p13 = scmp.lt.s32.totalorder %s571_s22, %s565_s8 }
  0x42   : > { %270 = vmatpush1.bf16.msra.mxu0 %v220_v12  ;;  %463 = vmatpush1.bf16.msra.mxu1 %v220_v12  ;;  %p568_p0 = pneg %p567_p11 }
  0x43   : > { %p574_p2 = por %p573_p13, %p572_p6 }
  0x44   : > { %247 = vperm.xlu1 %532, %v229_v17   ;;  %237 = vperm.xlu0 %531, %v227_v18  }
  0x45   : > { %451 = vmatmul.mubr.msk.bf16.vlgmr.msra.gmra.mrb[0].mxu0 %vm260_vm0, %v533_v15  ;;  %452 = vmatmul.mubr.msk.bf16.vlgmr.msra.gmra.mrb[0].mxu1 %vm260_vm0, %v534_v16  ;;  %p575_p5 = pnand %p574_p2, %p568_p0 }
  0xbf   : > { %v243_v19 = vpop.permute.xlu1 %242  ;;  %v233_v20 = vpop.permute.xlu0 %232 }
  0xc3   : > { %v248_v21 = vpop.permute.xlu1 %247  ;;  %v238_v22 = vpop.permute.xlu0 %237 }
 0x118   : > { %v301_v23 = vpop.f32.mrb[0].mxu0  ;;  %v311_v24 = vpop.f32.mrb[0].mxu1 }
 0x119   : > { %v302_v25 = vadd.f32 %v301_v23, %v233_v20  ;;  %v312_v26 = vadd.f32 %v311_v24, %v243_v19  ;;  %v303_v27 = vpop.f32.mrb[1].mxu0  ;;  %v313_v28 = vpop.f32.mrb[1].mxu1 }
 0x11a   : > { %v304_v29 = vadd.f32 %v303_v27, %v233_v20  ;;  %v314_v30 = vadd.f32 %v313_v28, %v243_v19  ;;  %v305_v31 = vpop.f32.mrb[2].mxu0  ;;  %v315_v32 = vpop.f32.mrb[2].mxu1 }
 0x11b   : > { %v320_v33 = vmax.f32 %v302_v25, 0.0  ;;  %v324_v34 = vmax.f32 %v312_v26, 0.0  ;;  %v306_v35 = vadd.f32 %v305_v31, %v238_v22  ;;  %v316_v36 = vadd.f32 %v315_v32, %v248_v21  ;;  %v307_v37 = vpop.f32.mrb[3].mxu0  ;;  %v317_v38 = vpop.f32.mrb[3].mxu1 }
 0x11c   : > { %v321_v39 = vmax.f32 %v304_v29, 0.0  ;;  %v325_v40 = vmax.f32 %v314_v30, 0.0  ;;  %v308_v41 = vadd.f32 %v307_v37, %v238_v22  ;;  %v318_v42 = vadd.f32 %v317_v38, %v248_v21 }
 0x11d   : > { %328 = vst [vmem:[%s818_s7] sm:$0xff] %v320_v33  ;;  %332 = vst [vmem:[%s818_s7 + $0x20] sm:$0xff] %v324_v34  ;;  %v322_v43 = vmax.f32 %v306_v35, 0.0  ;;  %v326_v44 = vmax.f32 %v316_v36, 0.0 }
 0x11e   : > { %329 = vst [vmem:[%s818_s7 + $0x8] sm:$0xff] %v321_v39  ;;  %333 = vst [vmem:[%s818_s7 + $0x28] sm:$0xff] %v325_v40  ;;  %v323_v45 = vmax.f32 %v308_v41, 0.0  ;;  %v327_v46 = vmax.f32 %v318_v42, 0.0 }
 0x11f   : > { %330 = vst [vmem:[%s818_s7 + $0x10] sm:$0xff] %v322_v43  ;;  %334 = vst [vmem:[%s818_s7 + $0x30] sm:$0xff] %v326_v44 }
 0x120   : > { %331 = vst [vmem:[%s818_s7 + $0x18] sm:$0xff] %v323_v45  ;;  %335 = vst [vmem:[%s818_s7 + $0x38] sm:$0xff] %v327_v46 }
 0x121   : > { %578 = shalt.err (!%p575_p5)
}
 0x122   : > { %s579_s23 = scalar_lea.hbm %s829_s24, 1024  ;;  %s583_s30 = scalar_lea.hbm %s887_s3, 2048 }
 0x123   : > { %p580_p4 = scmp.ne.s32.totalorder %s829_s24, %s579_s23  ;;  %p584_p12 = scmp.lt.u32.totalorder %s829_s24, %s887_s3 }
 0x124   : > { %p585_p1 = scmp.lt.u32.totalorder %s583_s30, %s579_s23  ;;  %p587_p8 = scmp.lt.u32.totalorder %s579_s23, %s829_s24 }
 0x125   : > { %p581_p7 = pnand %p580_p4, %p895_p9 }
 0x126   : > { %p586_p3 = por %p585_p1, %p584_p12 }
 0x127   : > { %p582_p10 = pneg %p581_p7 }
 0x128   : > { %p588_p11 = por %p587_p8, %p586_p3 }
 0x12a   : > { %p589_p0 = pnand %p588_p11, %p582_p10 }
 0x12c   : > { %592 = shalt.err (!%p589_p0)
}
 0x12d   : > { %s654_s7 = smov 256   ;;  %s655_s21 = smov 16  }
 0x12e   : > { %466 = dma.vmem_to_hbm [thread:$0]  (%p895_p9), %s822_s19, 1024, %s829_s24, %s337_s6, %s654_s7, %s654_s7, %s655_s21  }
 0x12f PF: > { %s367_s15 = sand.u32 1, %s627_s12   ;;  %p896_p6 = scmp.ne.s32.totalorder %s892_s27, 0 }
 0x130   : > { %p897_p13 = scmp.ge.s32.totalorder %s647_s17, 2  ;;  %s368_s18 = scalar_lea.sflag [#allocation4], %s367_s15 }
 0x132   : > { %p473_p2 = pnand %p897_p13, %p896_p6 }
 0x134   : > { %622 = dma.done.wait (!%p473_p2), %s368_s18, 1024  }
 0x135   : > { %624 = vsyncadd (!%p473_p2), %s368_s18, 4294966272  ;;  %s19_s17 = sadd.s32 1, %s647_s17   ;;  %s898_s12 = smov %s631_s13 }
 0x136   : > { %p16_p5 = scmp.ge.s32.totalorder %s19_s17, 4   ;;  %s899_s13 = smov %s635_s14 }
 0x137   : > { %s900_s14 = smov %s732_s26  ;;  %s901_s15 = smov %s643_s16 }
 0x138   : > { %s902_s16 = smov %s904_s20  ;;  %18 = sbr.rel (!%p16_p5) target bundleno = 6 (0x6), region = 77 }
 0x13f   :  { %373 = vsyncpa [#allocation3], 1 }
 0x140   :  { %375 = vsyncpa [#allocation3 + $0x1], 1 }
 0x141   :  { %376 = vsyncpa [#allocation4], 1 }
 0x142   :  { %378 = vsyncpa [#allocation4 + $0x1], 1 }

</bundles_post_ra>
